<compile_context>
chip_gen: v7x
topology: tpu7x:2x2x1
jax: 0.10.0
libtpu: 0.0.40
codegen_flags: <defaults>
</compile_context>

<pallas_src>
import functools

import jax
import jax.numpy as jnp
from jax.experimental import pallas as pl
from jax.experimental.pallas import tpu as pltpu


VMEM_LIMIT_BYTES = 48 * 1024 * 1024      # > v5e's 16 MiB scoped default,
                                         # < v7x's 64 MiB physical VMEM


def _round_up(x, m):
    return (x + m - 1) // m * m


# ----------------------------------------------------------------------------
# Fused (im2col-matmul + bias + residual + ReLU) Pallas kernel, K collapsed.
# Grid = (nn, nm): j (Cout tiles) outer, i (M tiles) inner, so the (Kp, tn)
# weight panel is VMEM-resident across the whole inner i sweep.
# ----------------------------------------------------------------------------
@functools.lru_cache(maxsize=None)
def _make_fused_kernel(relu, with_residual):
    if with_residual:
        def kernel(p_ref, w_ref, b_ref, r_ref, o_ref):
            y = jnp.dot(p_ref[...], w_ref[...],
                        preferred_element_type=jnp.float32)
            y = y + b_ref[...]
            y = y + r_ref[...].astype(jnp.float32)
            if relu:
                y = jnp.maximum(y, 0.0)
            o_ref[...] = y.astype(o_ref.dtype)
    else:
        def kernel(p_ref, w_ref, b_ref, o_ref):
            y = jnp.dot(p_ref[...], w_ref[...],
                        preferred_element_type=jnp.float32)
            y = y + b_ref[...]
            if relu:
                y = jnp.maximum(y, 0.0)
            o_ref[...] = y.astype(o_ref.dtype)
    return kernel


def fused_matmul(patches, cw, relu, residual=None, tm_max=512):
    """out[M, Cp] = act(patches @ wm + bias (+ residual)), bf16 in/out, f32 acc.

    patches:  [M, K] bf16 (im2col rows; K padding — if any — must be zeros)
    cw:       prepared conv dict (pre-padded bf16 weights, f32 bias, tiling)
    residual: optional [M, Cp] bf16
    """
    M, K = patches.shape
    Kp, Cp, tn, cout = cw['Kp'], cw['Cp'], cw['tn'], cw['cout']
    assert K == cw['K'], (K, cw['K'])
    if K < Kp:                              # conv1 only (K=147 -> 256); zeros!
        patches = jnp.pad(patches, ((0, 0), (0, Kp - K)))

    # Pick tm: keep the double-buffered working set inside the scoped VMEM
    # budget, cap at M (full-dim block) so small-M deep stages keep nn>=2
    # parallel extent for v7x's two TensorCores instead of one huge block.
    budget = int(0.7 * VMEM_LIMIT_BYTES)
    tm_cap = tm_max
    while tm_cap > 64 and (
            2 * 2 * (tm_cap * Kp + Kp * tn + 2 * tm_cap * tn)
            + 4 * tm_cap * tn) > budget:
        tm_cap //= 2
    tm = M if M <= tm_cap else tm_cap

    nm = pl.cdiv(M, tm)
    nn = Cp // tn
    kernel = _make_fused_kernel(bool(relu), residual is not None)

    in_specs = [
        pl.BlockSpec((tm, Kp), lambda j, i: (i, 0)),    # patches (streamed)
        pl.BlockSpec((Kp, tn), lambda j, i: (0, j)),    # weights (resident in i)
        pl.BlockSpec((1, tn), lambda j, i: (0, j)),     # bias
    ]
    args = [patches, cw['wm'], cw['bias']]
    if residual is not None:
        in_specs.append(pl.BlockSpec((tm, tn), lambda j, i: (i, j)))
        args.append(residual)

    flops = 2 * M * Kp * Cp
    bytes_acc = (M * Kp + Kp * Cp + M * Cp) * 2 + Cp * 4
    if residual is not None:
        bytes_acc += M * Cp * 2

    out = pl.pallas_call(
        kernel,
        out_shape=jax.ShapeDtypeStruct((M, Cp), jnp.bfloat16),
        grid_spec=pltpu.PrefetchScalarGridSpec(
            num_scalar_prefetch=0,
            grid=(nn, nm),
            in_specs=in_specs,
            out_specs=pl.BlockSpec((tm, tn), lambda j, i: (i, j)),
        ),
        compiler_params=pltpu.CompilerParams(
            dimension_semantics=("parallel", "parallel"),
            vmem_limit_bytes=VMEM_LIMIT_BYTES),
        cost_estimate=pl.CostEstimate(flops=flops, transcendentals=0,
                                      bytes_accessed=bytes_acc),
    )(*args)
    return out                               # [M, Cp], padded channels kept


# ----------------------------------------------------------------------------
# im2col glue + conv wrapper (activations carried channel-padded to Cp)
# ----------------------------------------------------------------------------
def _im2col(x, kh, kw, stride, padding, dilation):
    # TODO(synk): fuse the tap loop into the Pallas kernel to avoid this
    # kh*kw-fold HBM expansion of the activations.
    N, H, W, C = x.shape
    Ho = (H + 2 * padding - dilation * (kh - 1) - 1) // stride + 1
    Wo = (W + 2 * padding - dilation * (kw - 1) - 1) // stride + 1
    xp = jnp.pad(x, ((0, 0), (padding, padding), (padding, padding), (0, 0)))
    cols = []
    for i in range(kh):
        for j in range(kw):
            hi, wi = i * dilation, j * dilation
            cols.append(xp[:, hi:hi + (Ho - 1) * stride + 1:stride,
                           wi:wi + (Wo - 1) * stride + 1:stride, :])
    patches = jnp.concatenate(cols, axis=-1)           # [N, Ho, Wo, kh*kw*C]
    return patches.reshape(N * Ho * Wo, kh * kw * C), Ho, Wo


def conv_bn(x, cw, stride, padding, dilation, relu=False, residual=None):
    """x: [N,H,W,cin_pad] bf16 NHWC; returns [N,Ho,Wo,Cp] bf16 (channel-padded)."""
    N, H, W, C = x.shape
    assert C == cw['cin_pad'], (C, cw['cin_pad'])
    if cw['kh'] == 1 and cw['kw'] == 1:
        xs = x if stride == 1 else x[:, ::stride, ::stride, :]
        Ho, Wo = xs.shape[1], xs.shape[2]
        patches = xs.reshape(N * Ho * Wo, C)            # free reshape, no im2col
    else:
        patches, Ho, Wo = _im2col(x, cw['kh'], cw['kw'], stride, padding,
                                  dilation)
    res_flat = None
    if residual is not None:
        res_flat = residual.reshape(N * Ho * Wo, cw['Cp'])
    out = fused_matmul(patches, cw, relu, res_flat)
    return out.reshape(N, Ho, Wo, cw['Cp'])


# ----------------------------------------------------------------------------
# MaxPool2d(kernel=3, stride=2, padding=1, ceil_mode=True), Pallas kernel.
# Row taps (~1.5x input in HBM) + column parity split -> in-kernel column taps
# are contiguous shifts; no 9x window stack, lane width = padded C (128).
# ----------------------------------------------------------------------------
def maxpool_pallas(x, ksize=3, stride=2, padding=1):
    assert ksize == 3 and stride == 2
    N, H, W, C = x.shape

    def out_size(L):
        o = -(-(L + 2 * padding - ksize) // stride) + 1        # ceil formula
        if (o - 1) * stride >= L + padding:                    # PyTorch rule
            o -= 1
        return o

    Ho, Wo = out_size(H), out_size(W)
    neg = float(jnp.finfo(x.dtype).min)
    hp_need = (Ho - 1) * stride + ksize
    wp_need = (Wo - 1) * stride + ksize
    pad_h = max(hp_need - padding - H, 0)
    pad_w = max(wp_need - padding - W, 0)
    xp = jnp.pad(x, ((0, 0), (padding, pad_h), (padding, pad_w), (0, 0)),
                 constant_values=neg)

    row_len = (Ho - 1) * stride + 1
    rows = [xp[:, r:r + row_len:stride, :, :] for r in range(ksize)]
    M = N * Ho
    e_views = [rv[:, :, 0:2 * Wo + 1:2, :].reshape(M, Wo + 1, C) for rv in rows]
    o_views = [rv[:, :, 1:2 * Wo:2, :].reshape(M, Wo, C) for rv in rows]

    per_row_bytes = (3 * (Wo + 1) + 4 * Wo) * C * 2 * 2    # 6 in + 1 out, x2 buf
    tb = max(1, min(M, 256, (8 * 1024 * 1024) // max(per_row_bytes, 1)))

    def kernel(e0, e1, e2, o0, o1, o2, out_ref):
        me = jnp.maximum(jnp.maximum(e0[...], e1[...]), e2[...])  # (tb, Wo+1, C)
        mo = jnp.maximum(jnp.maximum(o0[...], o1[...]), o2[...])  # (tb, Wo,   C)
        y = jnp.maximum(me[:, :-1, :], me[:, 1:, :])
        out_ref[...] = jnp.maximum(y, mo)

    e_spec = pl.BlockSpec((tb, Wo + 1, C), lambda i: (i, 0, 0))
    o_spec = pl.BlockSpec((tb, Wo, C), lambda i: (i, 0, 0))

    out = pl.pallas_call(
        kernel,
        out_shape=jax.ShapeDtypeStruct((M, Wo, C), x.dtype),
        grid_spec=pltpu.PrefetchScalarGridSpec(
            num_scalar_prefetch=0,
            grid=(pl.cdiv(M, tb),),
            in_specs=[e_spec] * 3 + [o_spec] * 3,
            out_specs=o_spec,
        ),
        compiler_params=pltpu.CompilerParams(
            dimension_semantics=("parallel",)),
    )(*e_views, *o_views)
    return out.reshape(N, Ho, Wo, C)


# ----------------------------------------------------------------------------
# Parameter init (deterministic, synthetic) with BN fold + pre-padding
# ----------------------------------------------------------------------------
def _init_conv(key, kh, kw, cin, cout):
    return 0.05 * jax.random.normal(key, (kh, kw, cin, cout), jnp.float32)


def _init_bn(key, c, eps=1e-5):
    k1, k2, k3, k4 = jax.random.split(key, 4)
    gamma = 1.0 + 0.1 * jax.random.normal(k1, (c,), jnp.float32)
    beta = 0.1 * jax.random.normal(k2, (c,), jnp.float32)
    mean = 0.1 * jax.random.normal(k3, (c,), jnp.float32)
    var = 1.0 + 0.1 * jax.random.uniform(k4, (c,), jnp.float32)
    scale = gamma / jnp.sqrt(var + eps)
    bias = beta - mean * scale
    return scale, bias


def prepare_conv(w, scale, bias, cin_pad=None):
    """Fold BN scale into weights; pad cin->cin_pad, K->Kp, cout->Cp ONCE."""
    kh, kw, cin, cout = w.shape
    if cin_pad is None:
        cin_pad = cin
    K = kh * kw * cin_pad
    Kp = _round_up(K, 128)
    Cp = _round_up(cout, 128)
    if Cp >= 256:
        Cp = _round_up(cout, 256)
    if Cp % 512 == 0:
        tn = 512
    elif Cp % 256 == 0:
        tn = 256
    else:
        tn = Cp
    wf = w * scale[None, None, None, :]
    wf = jnp.pad(wf, ((0, 0), (0, 0), (0, cin_pad - cin), (0, 0)))
    wf = wf.reshape(K, cout)
    wm = jnp.pad(wf, ((0, Kp - K), (0, Cp - cout))).astype(jnp.bfloat16)
    bp = jnp.pad(bias, (0, Cp - cout)).astype(jnp.float32).reshape(1, Cp)
    return dict(wm=wm, bias=bp, kh=kh, kw=kw, cin_pad=cin_pad,
                K=K, Kp=Kp, cout=cout, Cp=Cp, tn=tn)


def init_resnet_params(key, layers, expansion=4):
    keys = iter(jax.random.split(key, 4096))
    nk = lambda: next(keys)

    params = {'conv1': prepare_conv(_init_conv(nk(), 7, 7, 3, 64),
                                    *_init_bn(nk(), 64), cin_pad=3)}
    inplanes = 64
    in_pad = params['conv1']['Cp']          # activations carried at Cp channels
    cfgs = [(64, layers[0], 1, 1), (128, layers[1], 2, 1),
            (256, layers[2], 2, 1), (512, layers[3], 1, 2)]
    params['layers'] = []
    for planes, blocks, stride, dilation in cfgs:
        blist = []
        for bi in range(blocks):
            st = stride if bi == 0 else 1
            has_ds = (bi == 0) and (stride != 1 or inplanes != planes * expansion)
            p = {'stride': st, 'dilation': dilation, 'has_ds': has_ds}
            p['c1'] = prepare_conv(_init_conv(nk(), 1, 1, inplanes, planes),
                                   *_init_bn(nk(), planes), cin_pad=in_pad)
            p['c2'] = prepare_conv(_init_conv(nk(), 3, 3, planes, planes),
                                   *_init_bn(nk(), planes),
                                   cin_pad=p['c1']['Cp'])
            p['c3'] = prepare_conv(
                _init_conv(nk(), 1, 1, planes, planes * expansion),
                *_init_bn(nk(), planes * expansion), cin_pad=p['c2']['Cp'])
            if has_ds:
                p['cd'] = prepare_conv(
                    _init_conv(nk(), 1, 1, inplanes, planes * expansion),
                    *_init_bn(nk(), planes * expansion), cin_pad=in_pad)
            blist.append(p)
            inplanes = planes * expansion
            in_pad = p['c3']['Cp']
        params['layers'].append(blist)
    return params


# ----------------------------------------------------------------------------
# Bottleneck block and full forward (bf16 NHWC, channel-padded between layers)
# ----------------------------------------------------------------------------
def bottleneck(x, p):
    stride, dilation = p['stride'], p['dilation']
    if p['has_ds']:
        # Emit the downsample first so its DMA/compute overlaps c1/c2.
        identity = conv_bn(x, p['cd'], stride, 0, 1, relu=False)
    else:
        identity = x
    out = conv_bn(x, p['c1'], 1, 0, 1, relu=True)
    out = conv_bn(out, p['c2'], stride, dilation, dilation, relu=True)
    # conv3 + bn3 + residual add + final ReLU fused in one Pallas call
    out = conv_bn(out, p['c3'], 1, 0, 1, relu=True, residual=identity)
    return out


def resnet_forward(x_nchw, params):
    x = jnp.transpose(x_nchw, (0, 2, 3, 1)).astype(jnp.bfloat16)  # NCHW->NHWC
    x = conv_bn(x, params['conv1'], 2, 3, 1, relu=True)           # Cp=128
    x1 = maxpool_pallas(x, ksize=3, stride=2, padding=1)
    feats = []
    cur = x1
    for blist in params['layers']:
        for p in blist:
            cur = bottleneck(cur, p)
        feats.append(cur)
    # Stage outputs have Cp == cout (256/512/1024/2048); back to NCHW f32.
    return [jnp.transpose(f, (0, 3, 1, 2)).astype(jnp.float32) for f in feats]


# ----------------------------------------------------------------------------
if __name__ == "__main__":
    key = jax.random.PRNGKey(0)
    kx, kp = jax.random.split(key)

    layers = [1, 1, 1, 1]          # small Bottleneck counts (module is generic)
    params = init_resnet_params(kp, layers)

    x = jax.random.normal(kx, (2, 3, 16, 16), jnp.float32)   # NCHW like PyTorch

    outs = resnet_forward(x, params)
    outs = [jax.block_until_ready(o) for o in outs]

    expected = [(2, 256, 5, 5), (2, 512, 3, 3), (2, 1024, 2, 2), (2, 2048, 2, 2)]
    got = [tuple(o.shape) for o in outs]
    assert got == expected, f"shape mismatch: {got} vs {expected}"
    assert all(bool(jnp.all(jnp.isfinite(o))) for o in outs)

    print("KERNEL_OK")
</pallas_src>

<mosaic_0001>
module attributes {stable_mosaic.version = 11 : i64} {
  func.func @kernel(%arg0: i32, %arg1: i32, %arg2: memref<128x256xbf16, #tpu.memory_space<vmem>>, %arg3: memref<256x128xbf16, #tpu.memory_space<vmem>>, %arg4: memref<1x128xf32, #tpu.memory_space<vmem>>, %arg5: memref<128x128xbf16, #tpu.memory_space<vmem>>) attributes {dimension_semantics = [#tpu.dimension_semantics<parallel>, #tpu.dimension_semantics<parallel>], iteration_bounds = array<i64: 1, 1>, scalar_prefetch = 0 : i64, scratch_operands = 0 : i64, tpu.core_type = #tpu.core_type<tc>, window_params = [{transform_indices = @transform_0, window_bounds = array<i64: 128, 256>}, {transform_indices = @transform_1, window_bounds = array<i64: 256, 128>}, {transform_indices = @transform_2, window_bounds = array<i64: 1, 128>}, {transform_indices = @transform_3, window_bounds = array<i64: 128, 128>}]} {
    %c0 = arith.constant 0 : index
    %c0_0 = arith.constant 0 : index
    %0 = vector.load %arg2[%c0, %c0_0] : memref<128x256xbf16, #tpu.memory_space<vmem>>, vector<128x256xbf16>
    %c0_1 = arith.constant 0 : index
    %c0_2 = arith.constant 0 : index
    %1 = vector.load %arg3[%c0_1, %c0_2] : memref<256x128xbf16, #tpu.memory_space<vmem>>, vector<256x128xbf16>
    %cst = arith.constant dense<0.000000e+00> : vector<128x128xf32>
    %2 = tpu.matmul %0, %1, %cst {dimension_numbers = #tpu.dot_dimension_numbers<[1], [0], [0], [1], [0, 0, 1, 1], [], []>} : vector<128x256xbf16>, vector<256x128xbf16>, vector<128x128xf32> -> vector<128x128xf32>
    %c0_3 = arith.constant 0 : index
    %c0_4 = arith.constant 0 : index
    %3 = vector.load %arg4[%c0_3, %c0_4] : memref<1x128xf32, #tpu.memory_space<vmem>>, vector<1x128xf32>
    %4 = vector.broadcast %3 : vector<1x128xf32> to vector<128x128xf32>
    %5 = arith.addf %2, %4 : vector<128x128xf32>
    %cst_5 = arith.constant 0.000000e+00 : f32
    %6 = vector.broadcast %cst_5 : f32 to vector<128x128xf32>
    %7 = arith.maximumf %5, %6 : vector<128x128xf32>
    %8 = arith.truncf %7 : vector<128x128xf32> to vector<128x128xbf16>
    %c0_6 = arith.constant 0 : index
    %c0_7 = arith.constant 0 : index
    %9 = vector.load %arg5[%c0_6, %c0_7] : memref<128x128xbf16, #tpu.memory_space<vmem>>, vector<128x128xbf16>
    tpu.vector_store %arg5[%c0_6, %c0_7], %8 {strides = array<i32>} : memref<128x128xbf16, #tpu.memory_space<vmem>>, vector<128x128xbf16>,
    return
  }
  func.func @transform_0(%arg0: i32, %arg1: i32) -> (i32, i32) {
    %c0_i32 = arith.constant 0 : i32
    %c0_i32_0 = arith.constant 0 : i32
    return %arg1, %c0_i32 : i32, i32
  }
  func.func @transform_1(%arg0: i32, %arg1: i32) -> (i32, i32) {
    %c0_i32 = arith.constant 0 : i32
    %c0_i32_0 = arith.constant 0 : i32
    return %c0_i32, %arg0 : i32, i32
  }
  func.func @transform_2(%arg0: i32, %arg1: i32) -> (i32, i32) {
    %c0_i32 = arith.constant 0 : i32
    %c0_i32_0 = arith.constant 0 : i32
    return %c0_i32, %arg0 : i32, i32
  }
  func.func @transform_3(%arg0: i32, %arg1: i32) -> (i32, i32) {
    %c0_i32 = arith.constant 0 : i32
    return %arg1, %arg0 : i32, i32
  }
}

</mosaic_0001>

<bundles_post_ra>
// kernel: tpu_custom_call.1
= control target key start
LH: loop header
LB: loop body
LE: loop exit
PB: predicated region body
PF: predicated region fallthrough
CT: control target
= control target key end

     0   :  { %8 = vsyncpa [#allocation3], 0  ;;  %s887_s0 = inlined_call_operand.hbm [shape: bf16[128,256], index: 0, kind: input, shape index: {}]   ;;  %s888_s1 = inlined_call_operand.hbm [shape: bf16[256,128], index: 1, kind: input, shape index: {}]   ;;  %s889_s2 = inlined_call_operand.vmem [shape: f32[1,128], index: 2, kind: input, shape index: {}]   ;;  %s890_s3 = inlined_call_operand.hbm [shape: bf16[128,128], index: 3, kind: output, shape index: {}]  }
   0x1   :  { %9 = vsyncpa [#allocation6], 0 }
   0x2   :  { %10 = vsyncpa [#allocation4], 0  ;;  %s797_s12 = smov [#allocation2]   ;;  %s725_s16 = scalar_lea.hbm %s887_s0, 2048 }
   0x3   :  { %s16_s13 = sshll.u32 %s797_s12, 4  ;;  %p726_p0 = scmp.ne.s32.totalorder %s887_s0, %s725_s16  ;;  %s17_s13 = int_to_ptr.vmem [resolvable:$true] %s16_s13 }
   0x4   :  { %p729_p1 = scmp.lt.u32.totalorder %s725_s16, %s887_s0 }
   0x6   :  { %p731_p2 = pnand %p729_p1, %p726_p0 }
   0x8   :  { %734 = shalt.err (!%p731_p2)
}
   0x9   :  { %s735_s21 = scalar_lea.vmem %s17_s13, 2048  ;;  %p740_p4 = scmp.lt.s32.totalorder %s17_s13, %s17_s13 }
   0xa   :  { %p736_p3 = scmp.ne.s32.totalorder %s17_s13, %s735_s21  ;;  %p741_p5 = scmp.lt.s32.totalorder %s735_s21, %s735_s21 }
   0xc   :  { %p742_p6 = por %p741_p5, %p740_p4 }
   0xe   :  { %p743_p7 = pnand %p742_p6, %p736_p3 }
  0x10   :  { %746 = shalt.err (!%p743_p7)
}
  0x11   :  { %s798_s22 = smov 128   ;;  %s799_s23 = smov 8  }
  0x12   :  { %22 = dma.hbm_to_vmem [thread:$0]  %s887_s0, 2048, %s17_s13, [#allocation3], %s798_s22, %s798_s22, %s799_s23  }
  0x13   :  { %s800_s26 = smov [#allocation5]   ;;  %s747_s30 = scalar_lea.hbm %s888_s1, 2048 }
  0x14   :  { %s28_s27 = sshll.u32 %s800_s26, 4  ;;  %p748_p8 = scmp.ne.s32.totalorder %s888_s1, %s747_s30  ;;  %s29_s27 = int_to_ptr.vmem [resolvable:$true] %s28_s27 }
  0x15   :  { %p751_p9 = scmp.lt.u32.totalorder %s747_s30, %s888_s1 }
  0x17   :  { %p753_p10 = pnand %p751_p9, %p748_p8 }
  0x19   :  { %756 = shalt.err (!%p753_p10)
}
  0x1a   :  { %s757_s8 = scalar_lea.vmem %s29_s27, 2048  ;;  %p762_p12 = scmp.lt.s32.totalorder %s29_s27, %s29_s27 }
  0x1b   :  { %p758_p11 = scmp.ne.s32.totalorder %s29_s27, %s757_s8  ;;  %p763_p13 = scmp.lt.s32.totalorder %s757_s8, %s757_s8 }
  0x1d   :  { %p764_p0 = por %p763_p13, %p762_p12 }
  0x1f   :  { %p765_p1 = pnand %p764_p0, %p758_p11 }
  0x21   :  { %768 = shalt.err (!%p765_p1)
}
  0x22   :  { %s801_s0 = smov 64   ;;  %s802_s9 = smov 4  }
  0x23   :  { %34 = dma.hbm_to_vmem [thread:$0]  %s888_s1, 2048, %s29_s27, [#allocation6], %s801_s0, %s801_s0, %s802_s9  }
  0x24   :  { %791 = dma.done.wait [#allocation3], 2048  }
  0x25   :  { %792 = vsyncadd [#allocation3], 4294965248 }
  0x26   :  { %793 = dma.done.wait [#allocation6], 2048  }
  0x27   :  { %794 = vsyncadd [#allocation6], 4294965248  ;;  %v685_v0 = vld [vmem:[#allocation5 + $0x40] sm:$0xff]   ;;  %v687_v2 = vld [vmem:[#allocation5 + $0x48] sm:$0xff]  }
  0x28   :  { %v686_v1 = vld [vmem:[#allocation5] sm:$0xff]   ;;  %598 = vmatprep.subr.bf16.mxu0 %v685_v0  ;;  %662 = vmatprep.subr.bf16.mxu1 %v685_v0  ;;  %v688_v3 = vld [vmem:[#allocation5 + $0x8] sm:$0xff]   ;;  %v689_v4 = vld [vmem:[#allocation5 + $0x50] sm:$0xff]  }
  0x29   :  { %599 = vmatpush3.bf16.msra.mxu0 %v686_v1  ;;  %670 = vmatpush3.bf16.msra.mxu1 %v686_v1  ;;  %v690_v5 = vld [vmem:[#allocation5 + $0x10] sm:$0xff]   ;;  %v691_v6 = vld [vmem:[#allocation5 + $0x58] sm:$0xff]   ;;  %v693_v8 = vld [vmem:[#allocation5 + $0x60] sm:$0xff]  }
  0x2a   :  { %600 = vmatprep.subr.bf16.mxu0 %v687_v2  ;;  %663 = vmatprep.subr.bf16.mxu1 %v687_v2  ;;  %v692_v7 = vld [vmem:[#allocation5 + $0x18] sm:$0xff]   ;;  %v694_v9 = vld [vmem:[#allocation5 + $0x20] sm:$0xff]   ;;  %v695_v10 = vld [vmem:[#allocation5 + $0x68] sm:$0xff]  }
  0x2b   :  { %v703_v11 = vld [vmem:[#allocation2 + $0x4] ss:$8 sps:$4 sm:$0xff]   ;;  %v697_v14 = vld [vmem:[#allocation5 + $0x70] sm:$0xff]   ;;  %v699_v16 = vld [vmem:[#allocation5 + $0x78] sm:$0xff]  }
  0x2c   :  { %v706_v12 = vld [vmem:[#allocation2 + $0x44] ss:$8 sps:$4 sm:$0xff]   ;;  %307 = vmatprep.mubr.bf16.mxu0 %v703_v11  ;;  %v698_v15 = vld [vmem:[#allocation5 + $0x30] sm:$0xff]   ;;  %v700_v17 = vld [vmem:[#allocation5 + $0x38] sm:$0xff]  }
  0x2d   :  { %601 = vmatpush3.bf16.msra.mxu0 %v688_v3  ;;  %671 = vmatpush3.bf16.msra.mxu1 %v688_v3  ;;  %v696_v13 = vld [vmem:[#allocation5 + $0x28] sm:$0xff]   ;;  %v707_v20 = vld [vmem:[#allocation2 + $0x14] ss:$8 sps:$4 sm:$0xff]   ;;  %v711_v22 = vld [vmem:[#allocation2 + $0x10] ss:$8 sps:$4 sm:$0xff]  }
  0x2e   :  { %602 = vmatprep.subr.bf16.mxu0 %v689_v4  ;;  %664 = vmatprep.subr.bf16.mxu1 %v689_v4  ;;  %v701_v18 = vld [vmem:[#allocation2] ss:$8 sps:$4 sm:$0xff]   ;;  %v709_v21 = vld [vmem:[#allocation2 + $0x54] ss:$8 sps:$4 sm:$0xff]   ;;  %v712_v23 = vld [vmem:[#allocation2 + $0x50] ss:$8 sps:$4 sm:$0xff]  }
  0x2f   :  { %339 = vmatprep.mubr.bf16.mxu1 %v706_v12  ;;  %v704_v19 = vld [vmem:[#allocation2 + $0x40] ss:$8 sps:$4 sm:$0xff]   ;;  %v713_v24 = vld [vmem:[#allocation2 + $0x24] ss:$8 sps:$4 sm:$0xff]   ;;  %v719_v28 = vld [vmem:[#allocation2 + $0x34] ss:$8 sps:$4 sm:$0xff]  }
  0x30   :  { %v715_v25 = vld [vmem:[#allocation2 + $0x64] ss:$8 sps:$4 sm:$0xff]   ;;  %v717_v26 = vld [vmem:[#allocation2 + $0x20] ss:$8 sps:$4 sm:$0xff]   ;;  %v721_v29 = vld [vmem:[#allocation2 + $0x74] ss:$8 sps:$4 sm:$0xff]  }
  0x31   :  { %603 = vmatpush3.bf16.msra.mxu0 %v690_v5  ;;  %672 = vmatpush3.bf16.msra.mxu1 %v690_v5  ;;  %v718_v27 = vld [vmem:[#allocation2 + $0x60] ss:$8 sps:$4 sm:$0xff]   ;;  %v723_v30 = vld [vmem:[#allocation2 + $0x30] ss:$8 sps:$4 sm:$0xff]  }
  0x32   :  { %604 = vmatprep.subr.bf16.mxu0 %v691_v6  ;;  %665 = vmatprep.subr.bf16.mxu1 %v691_v6  ;;  %v724_v31 = vld [vmem:[#allocation2 + $0x70] ss:$8 sps:$4 sm:$0xff]   ;;  %v854_v34 = vld [vmem:[%s889_s2] ss:$0 sm:$0xff]  ;;  %s803_s2 = smov [#allocation7]  }
  0x33   :  { %s473_s13 = sshll.u32 %s803_s2, 4  ;;  %s474_s13 = int_to_ptr.vmem [resolvable:$true] %s473_s13 }
  0x34   :  { %s769_s14 = scalar_lea.vmem %s474_s13, 1024  ;;  %p774_p3 = scmp.lt.s32.totalorder %s474_s13, %s474_s13 }
  0x35   :  { %605 = vmatpush3.bf16.msra.mxu0 %v692_v7  ;;  %673 = vmatpush3.bf16.msra.mxu1 %v692_v7  ;;  %p770_p2 = scmp.ne.s32.totalorder %s474_s13, %s769_s14  ;;  %p775_p4 = scmp.lt.s32.totalorder %s769_s14, %s769_s14 }
  0x36   :  { %606 = vmatprep.subr.bf16.mxu0 %v693_v8  ;;  %666 = vmatprep.subr.bf16.mxu1 %v693_v8 }
  0x37   :  { %p776_p5 = por %p775_p4, %p774_p3 }
  0x39   :  { %607 = vmatpush3.bf16.msra.mxu0 %v694_v9  ;;  %674 = vmatpush3.bf16.msra.mxu1 %v694_v9  ;;  %p777_p6 = pnand %p776_p5, %p770_p2 }
  0x3a   :  { %608 = vmatprep.subr.bf16.mxu0 %v695_v10  ;;  %667 = vmatprep.subr.bf16.mxu1 %v695_v10 }
  0x3d   :  { %609 = vmatpush3.bf16.msra.mxu0 %v696_v13  ;;  %675 = vmatpush3.bf16.msra.mxu1 %v696_v13 }
  0x3e   :  { %610 = vmatprep.subr.bf16.mxu0 %v697_v14  ;;  %668 = vmatprep.subr.bf16.mxu1 %v697_v14 }
  0x41   :  { %611 = vmatpush3.bf16.msra.mxu0 %v698_v15  ;;  %676 = vmatpush3.bf16.msra.mxu1 %v698_v15 }
  0x42   :  { %612 = vmatprep.subr.bf16.mxu0 %v699_v16  ;;  %669 = vmatprep.subr.bf16.mxu1 %v699_v16 }
  0x45   :  { %613 = vmatpush3.bf16.msra.mxu0 %v700_v17  ;;  %677 = vmatpush3.bf16.msra.mxu1 %v700_v17 }
  0x48   :  { %308 = vmatmul.mubr.bf16.vlgmr.msra.gmra.mrb[0].mxu0 %v701_v18  ;;  %340 = vmatmul.mubr.bf16.vlgmr.msra.gmra.mrb[0].mxu1 %v704_v19 }
  0x49   :  { %315 = vmatprep.mubr.bf16.mxu0 %v707_v20  ;;  %347 = vmatprep.mubr.bf16.mxu1 %v709_v21 }
  0x50   :  { %316 = vmatmul.mubr.bf16.gmra.mrb[4].mxu0 %v711_v22  ;;  %348 = vmatmul.mubr.bf16.gmra.mrb[4].mxu1 %v712_v23 }
  0x51   :  { %323 = vmatprep.mubr.bf16.mxu0 %v713_v24  ;;  %355 = vmatprep.mubr.bf16.mxu1 %v715_v25 }
  0x58   :  { %324 = vmatmul.mubr.bf16.gmra.mrb[8].mxu0 %v717_v26  ;;  %356 = vmatmul.mubr.bf16.gmra.mrb[8].mxu1 %v718_v27 }
  0x59   :  { %331 = vmatprep.mubr.bf16.mxu0 %v719_v28  ;;  %363 = vmatprep.mubr.bf16.mxu1 %v721_v29 }
  0x60   :  { %332 = vmatmul.mubr.bf16.gmra.mrb[12].mxu0 %v723_v30  ;;  %364 = vmatmul.mubr.bf16.gmra.mrb[12].mxu1 %v724_v31 }
 0x11b   :  { %v614_v32 = vpop.f32.mrb[0].mxu0  ;;  %v638_v33 = vpop.f32.mrb[0].mxu1 }
 0x11c   :  { %v615_v35 = vpop.f32.mrb[1].mxu0  ;;  %v639_v36 = vpop.f32.mrb[1].mxu1 }
 0x11d   :  { %v616_v37 = vadd.f32 %v615_v35, %v614_v32  ;;  %v640_v38 = vadd.f32 %v639_v36, %v638_v33  ;;  %v617_v39 = vpop.f32.mrb[2].mxu0  ;;  %v641_v40 = vpop.f32.mrb[2].mxu1 }
 0x11e   :  { %v618_v41 = vpop.f32.mrb[3].mxu0  ;;  %v642_v42 = vpop.f32.mrb[3].mxu1 }
 0x11f   :  { %v310_v43 = vadd.f32 %v616_v37, %v854_v34  ;;  %v342_v44 = vadd.f32 %v640_v38, %v854_v34  ;;  %v619_v45 = vadd.f32 %v618_v41, %v617_v39  ;;  %v643_v46 = vadd.f32 %v642_v42, %v641_v40 }
 0x121   :  { %v313_v47 = vadd.f32 %v619_v45, %v854_v34  ;;  %v345_v48 = vadd.f32 %v643_v46, %v854_v34  ;;  %v372_v49 = vmax.f32 %v310_v43, 0.0  ;;  %v380_v50 = vmax.f32 %v342_v44, 0.0 }
 0x123   :  { %v373_v51 = vmax.f32 %v313_v47, 0.0  ;;  %v381_v52 = vmax.f32 %v345_v48, 0.0  ;;  %v620_v53 = vpop.f32.mrb[4].mxu0  ;;  %v644_v54 = vpop.f32.mrb[4].mxu1 }
 0x124   :  { %v621_v55 = vpop.f32.mrb[5].mxu0  ;;  %v645_v56 = vpop.f32.mrb[5].mxu1 }
 0x125   :  { %v554_v57 = vpack.c.bf16 %v373_v51, %v372_v49  ;;  %v574_v58 = vpack.c.bf16 %v381_v52, %v380_v50  ;;  %v622_v59 = vadd.f32 %v621_v55, %v620_v53  ;;  %v646_v60 = vadd.f32 %v645_v56, %v644_v54  ;;  %v623_v61 = vpop.f32.mrb[6].mxu0  ;;  %v647_v62 = vpop.f32.mrb[6].mxu1 }
 0x126   :  { %v624_v63 = vpop.f32.mrb[7].mxu0  ;;  %v648_v0 = vpop.f32.mrb[7].mxu1 }
 0x127   :  { %555 = vst [vmem:[#allocation7] sm:$0xff] %v554_v57   ;;  %594 = vst [vmem:[#allocation7 + $0x20] sm:$0xff] %v574_v58   ;;  %v318_v1 = vadd.f32 %v622_v59, %v854_v34  ;;  %v350_v2 = vadd.f32 %v646_v60, %v854_v34  ;;  %v625_v3 = vadd.f32 %v624_v63, %v623_v61 }
 0x128   :  { %v649_v4 = vadd.f32 %v648_v0, %v647_v62 }
 0x129   :  { %v321_v5 = vadd.f32 %v625_v3, %v854_v34  ;;  %v374_v7 = vmax.f32 %v318_v1, 0.0  ;;  %v382_v8 = vmax.f32 %v350_v2, 0.0 }
 0x12a   :  { %v353_v6 = vadd.f32 %v649_v4, %v854_v34 }
 0x12b   :  { %v375_v9 = vmax.f32 %v321_v5, 0.0  ;;  %v626_v11 = vpop.f32.mrb[8].mxu0  ;;  %v650_v12 = vpop.f32.mrb[8].mxu1 }
 0x12c   :  { %v383_v10 = vmax.f32 %v353_v6, 0.0  ;;  %v627_v13 = vpop.f32.mrb[9].mxu0  ;;  %v651_v14 = vpop.f32.mrb[9].mxu1 }
 0x12d   :  { %v559_v15 = vpack.c.bf16 %v375_v9, %v374_v7  ;;  %v628_v17 = vadd.f32 %v627_v13, %v626_v11  ;;  %v652_v18 = vadd.f32 %v651_v14, %v650_v12  ;;  %v629_v19 = vpop.f32.mrb[10].mxu0  ;;  %v653_v20 = vpop.f32.mrb[10].mxu1 }
 0x12e   :  { %v579_v16 = vpack.c.bf16 %v383_v10, %v382_v8  ;;  %v630_v21 = vpop.f32.mrb[11].mxu0  ;;  %v654_v22 = vpop.f32.mrb[11].mxu1 }
 0x12f   :  { %591 = vst [vmem:[#allocation7 + $0x8] sm:$0xff] %v559_v15   ;;  %v326_v23 = vadd.f32 %v628_v17, %v854_v34  ;;  %v358_v24 = vadd.f32 %v652_v18, %v854_v34  ;;  %v631_v25 = vadd.f32 %v630_v21, %v629_v19  ;;  %v655_v26 = vadd.f32 %v654_v22, %v653_v20 }
 0x130   :  { %595 = vst [vmem:[#allocation7 + $0x28] sm:$0xff] %v579_v16  }
 0x131   :  { %v329_v27 = vadd.f32 %v631_v25, %v854_v34  ;;  %v361_v28 = vadd.f32 %v655_v26, %v854_v34  ;;  %v376_v29 = vmax.f32 %v326_v23, 0.0  ;;  %v384_v30 = vmax.f32 %v358_v24, 0.0 }
 0x133   :  { %v377_v31 = vmax.f32 %v329_v27, 0.0  ;;  %v385_v32 = vmax.f32 %v361_v28, 0.0  ;;  %v632_v33 = vpop.f32.mrb[12].mxu0  ;;  %v656_v35 = vpop.f32.mrb[12].mxu1 }
 0x134   :  { %v633_v36 = vpop.f32.mrb[13].mxu0  ;;  %v657_v37 = vpop.f32.mrb[13].mxu1 }
 0x135   :  { %v564_v38 = vpack.c.bf16 %v377_v31, %v376_v29  ;;  %v584_v39 = vpack.c.bf16 %v385_v32, %v384_v30  ;;  %v634_v40 = vadd.f32 %v633_v36, %v632_v33  ;;  %v658_v41 = vadd.f32 %v657_v37, %v656_v35  ;;  %v635_v42 = vpop.f32.mrb[14].mxu0  ;;  %v659_v43 = vpop.f32.mrb[14].mxu1 }
 0x136   :  { %v636_v44 = vpop.f32.mrb[15].mxu0  ;;  %v660_v45 = vpop.f32.mrb[15].mxu1 }
 0x137   :  { %592 = vst [vmem:[#allocation7 + $0x10] sm:$0xff] %v564_v38   ;;  %596 = vst [vmem:[#allocation7 + $0x30] sm:$0xff] %v584_v39   ;;  %v334_v46 = vadd.f32 %v634_v40, %v854_v34  ;;  %v366_v47 = vadd.f32 %v658_v41, %v854_v34  ;;  %v637_v48 = vadd.f32 %v636_v44, %v635_v42 }
 0x138   :  { %v661_v49 = vadd.f32 %v660_v45, %v659_v43 }
 0x139   :  { %v337_v50 = vadd.f32 %v637_v48, %v854_v34  ;;  %v378_v52 = vmax.f32 %v334_v46, 0.0  ;;  %v386_v53 = vmax.f32 %v366_v47, 0.0 }
 0x13a   :  { %v369_v51 = vadd.f32 %v661_v49, %v854_v34 }
 0x13b   :  { %v379_v54 = vmax.f32 %v337_v50, 0.0 }
 0x13c   :  { %v387_v55 = vmax.f32 %v369_v51, 0.0 }
 0x13d   :  { %v569_v56 = vpack.c.bf16 %v379_v54, %v378_v52 }
 0x13e   :  { %v589_v57 = vpack.c.bf16 %v387_v55, %v386_v53 }
 0x13f   :  { %593 = vst [vmem:[#allocation7 + $0x18] sm:$0xff] %v569_v56  }
 0x140   :  { %597 = vst [vmem:[#allocation7 + $0x38] sm:$0xff] %v589_v57  }
 0x141   :  { %780 = shalt.err (!%p777_p6)
}
 0x142   :  { %s781_s17 = scalar_lea.hbm %s890_s3, 1024 }
 0x143   :  { %p782_p7 = scmp.ne.s32.totalorder %s890_s3, %s781_s17  ;;  %p785_p8 = scmp.lt.u32.totalorder %s781_s17, %s890_s3 }
 0x145   :  { %p787_p9 = pnand %p785_p8, %p782_p7 }
 0x147   :  { %790 = shalt.err (!%p787_p9)
}
 0x148   :  { %479 = dma.vmem_to_hbm [thread:$0]  %s474_s13, 1024, %s890_s3, [#allocation4], %s801_s0, %s801_s0, %s802_s9  }
 0x149   :  { %795 = dma.done.wait [#allocation4], 1024  }
 0x14a   :  { %796 = vsyncadd [#allocation4], 4294966272 }
 0x14b   :  { %483 = vsyncpa [#allocation3], 1 }
 0x14c   :  { %484 = vsyncpa [#allocation6], 1 }
 0x14d   :  { %485 = vsyncpa [#allocation4], 1 }

</bundles_post_ra>
